<compile_context>
chip_gen: v7x
topology: tpu7x:2x2x1
jax: 0.10.0
libtpu: 0.0.40
codegen_flags: <defaults>
</compile_context>

<pallas_src>
import functools

import jax
import jax.numpy as jnp
from jax.experimental import pallas as pl
from jax.experimental.pallas import tpu as pltpu

# Layer widths of Net_10ReLU: nfeatures -> 128 -> 100 -> ... -> 8 -> 1
LAYER_DIMS = [128, 100, 64, 48, 32, 24, 16, 12, 8, 1]
# Zero-padded, lane-friendlier widths used inside the kernel.
PADDED_DIMS = [128, 128, 64, 64, 32, 32, 16, 16, 8, 8]
NUM_LAYERS = len(LAYER_DIMS)

# Preferred batch tile (rows).  Per-tile work is tiny, so big tiles amortize the
# ~0.35 us per-grid-step overhead and give the 10 serial matmuls enough rows to
# hide MXU latency; VMEM stays at a few MiB even at 1024 rows.
DEFAULT_TILE_B = 1024


def _round_up(x, m):
    return ((x + m - 1) // m) * m


def _use_bf16_elementwise():
    """bf16 bias-add/ReLU on chips with bf16 VALUs (v6e/v7x); f32 on v5."""
    try:
        kind = jax.devices()[0].device_kind.lower()
    except Exception:
        return True
    return "v5" not in kind


_ELEM_BF16 = _use_bf16_elementwise()


def _in_pads(nfeat_pad):
    return (nfeat_pad,) + tuple(PADDED_DIMS[:-1])


def _mlp_kernel(x_ref, w_ref, b_ref, out_ref, *, in_pads, out_pads, row_offs,
                elem_bf16):
    """x_ref: (tile_b, nfeat_pad) bf16; w_ref: (total_rows, 128) bf16;
    b_ref: (10, 128) f32; out_ref: (tile_b, 8) f32."""
    h = x_ref[...]                                       # bf16 activations
    for i in range(NUM_LAYERS):                          # static unroll
        ip, op, off = in_pads[i], out_pads[i], row_offs[i]
        w = w_ref[off:off + ip, 0:op]                    # (ip, op) bf16, static slice
        b = b_ref[i:i + 1, 0:op]                         # (1, op) f32
        acc = jnp.dot(h, w, preferred_element_type=jnp.float32)   # MXU, f32 acc
        if i + 1 < NUM_LAYERS:
            if elem_bf16:
                # bf16 VALUs: cast once, add/ReLU in bf16 (halves VPU/vreg work).
                h = jnp.maximum(acc.astype(jnp.bfloat16) + b.astype(jnp.bfloat16),
                                0.0)
            else:
                # v5 path: f32 add/ReLU, single truncation to bf16 for next MXU.
                h = jnp.maximum(acc + b, 0.0).astype(jnp.bfloat16)
        else:
            # Final layer: ReLU then exact sigmoid, all in f32 (tiny 8-wide tile).
            z = jnp.maximum(acc + b, 0.0)
            out_ref[...] = (1.0 / (1.0 + jnp.exp(-z))).astype(out_ref.dtype)


def pack_params(params, nfeatures):
    """One-time setup: zero-pad every layer and pack into two blobs.

    Returns (w_blob, b_blob):
      w_blob: (sum(in_pads), 128) bf16 — layer i occupies rows
              [row_off_i, row_off_i + in_pad_i), cols [0, out_pad_i); zeros elsewhere.
      b_blob: (10, 128) f32 — row i is bias i zero-padded to 128 lanes.
    """
    nfeat_pad = _round_up(max(nfeatures, 1), 16)
    in_dims = [nfeatures] + LAYER_DIMS[:-1]
    in_pads = _in_pads(nfeat_pad)
    w_parts, b_parts = [], []
    for i, (w, b) in enumerate(params):
        assert w.shape == (in_dims[i], LAYER_DIMS[i])
        w_parts.append(jnp.pad(jnp.asarray(w, jnp.float32),
                               ((0, in_pads[i] - w.shape[0]),
                                (0, 128 - w.shape[1]))))
        b_parts.append(jnp.pad(jnp.reshape(jnp.asarray(b, jnp.float32), (1, -1)),
                               ((0, 0), (0, 128 - int(b.size)))))
    w_blob = jnp.concatenate(w_parts, axis=0).astype(jnp.bfloat16)
    b_blob = jnp.concatenate(b_parts, axis=0)            # (10, 128) f32
    return w_blob, b_blob


def net_10relu_forward(x, packed, tile_b=DEFAULT_TILE_B):
    """x: (B, nfeatures) f32.  packed: output of pack_params."""
    w_blob, b_blob = packed
    batch, nfeat = x.shape
    nfeat_pad = _round_up(max(nfeat, 1), 16)
    in_pads = _in_pads(nfeat_pad)
    out_pads = tuple(PADDED_DIMS)

    row_offs, off = [], 0
    for ip in in_pads:
        row_offs.append(off)
        off += ip
    total_rows = off
    assert w_blob.shape == (total_rows, 128) and w_blob.dtype == jnp.bfloat16
    assert b_blob.shape == (NUM_LAYERS, 128)

    # Batch tiling: large tiles amortize per-step overhead; force >=2 grid steps
    # when the batch permits so both TensorCores are used on v7x.
    tile_b = max(8, min(tile_b, _round_up(batch, 8)))
    if _round_up(batch, 8) >= 16:
        tile_b = min(tile_b, _round_up((batch + 1) // 2, 8))
    padded_b = _round_up(batch, tile_b)
    grid = (padded_b // tile_b,)

    # bf16 input stream (matmuls already truncate to bf16, so no extra loss).
    x_p = x.astype(jnp.bfloat16)
    pad_r, pad_c = padded_b - batch, nfeat_pad - nfeat
    if pad_r or pad_c:
        x_p = jnp.pad(x_p, ((0, pad_r), (0, pad_c)))

    out_w = PADDED_DIMS[-1]
    # Explicit VMEM budget: double-buffered x/out tiles + resident param blobs
    # + headroom for the unrolled f32 activation temporaries.
    est = (2 * tile_b * nfeat_pad * 2
           + 2 * w_blob.size * 2
           + 2 * b_blob.size * 4
           + 2 * tile_b * out_w * 4
           + 8 * tile_b * 128 * 4)
    vmem_limit = int(min(max(est + (4 << 20), 32 << 20), 60 << 20))

    kernel = functools.partial(
        _mlp_kernel, in_pads=in_pads, out_pads=out_pads,
        row_offs=tuple(row_offs), elem_bf16=_ELEM_BF16)

    out = pl.pallas_call(
        kernel,
        out_shape=jax.ShapeDtypeStruct((padded_b, out_w), jnp.float32),
        grid=grid,
        in_specs=[
            pl.BlockSpec((tile_b, nfeat_pad), lambda i: (i, 0)),   # x: batch-tiled
            pl.BlockSpec(w_blob.shape, lambda i: (0, 0)),          # VMEM-resident
            pl.BlockSpec(b_blob.shape, lambda i: (0, 0)),          # VMEM-resident
        ],
        out_specs=pl.BlockSpec((tile_b, out_w), lambda i: (i, 0)),
        compiler_params=pltpu.CompilerParams(
            dimension_semantics=("parallel",),      # megacore on v7x
            vmem_limit_bytes=vmem_limit),
    )(x_p, w_blob, b_blob)

    # Drop batch padding; real output is column 0 of the zero-padded width-8 block.
    return out[:batch, :1]


def init_params(key, nfeatures):
    """Deterministic Xavier-uniform weights, bias = 0.01 (matches init_weights)."""
    params = []
    fan_in = nfeatures
    for fan_out in LAYER_DIMS:
        key, sub = jax.random.split(key)
        limit = (6.0 / (fan_in + fan_out)) ** 0.5
        w = jax.random.uniform(
            sub, (fan_in, fan_out), minval=-limit, maxval=limit, dtype=jnp.float32
        )
        b = jnp.full((1, fan_out), 0.01, dtype=jnp.float32)
        params.append((w, b))
        fan_in = fan_out
    return params


def reference_forward(x, params):
    """Pure-JAX f32 reference (ReLU on every layer incl. the last, then sigmoid)."""
    h = x
    for w, b in params:
        h = jnp.maximum(h @ w + b, 0.0)
    return jax.nn.sigmoid(h)


if __name__ == "__main__":
    key = jax.random.PRNGKey(0)
    nfeatures = 32
    batch = 64

    key, xkey = jax.random.split(key)
    x = jax.random.normal(xkey, (batch, nfeatures), dtype=jnp.float32)
    params = init_params(key, nfeatures)

    packed = pack_params(params, nfeatures)          # one-time setup, outside forward
    fwd = jax.jit(net_10relu_forward)

    out = jax.block_until_ready(fwd(x, packed))

    ref = reference_forward(x, params)
    assert out.shape == (batch, 1)
    # bf16 matmuls vs. the f32 reference -> loose tolerance.
    assert jnp.allclose(out, ref, atol=2e-2, rtol=2e-2), "mismatch vs reference"

    print("KERNEL_OK")
</pallas_src>

<mosaic_0001>
module attributes {stable_mosaic.version = 11 : i64} {
  func.func @_mlp_kernel(%arg0: i32, %arg1: memref<32x32xbf16, #tpu.memory_space<vmem>>, %arg2: memref<520x128xbf16, #tpu.memory_space<vmem>>, %arg3: memref<10x128xf32, #tpu.memory_space<vmem>>, %arg4: memref<32x8xf32, #tpu.memory_space<vmem>>) attributes {dimension_semantics = [#tpu.dimension_semantics<parallel>], iteration_bounds = array<i64: 2>, scalar_prefetch = 0 : i64, scratch_operands = 0 : i64, tpu.core_type = #tpu.core_type<tc>, window_params = [{transform_indices = @transform_0, window_bounds = array<i64: 32, 32>}, {pipeline_mode = #tpu.pipeline_mode<synchronous>, transform_indices = @transform_1, window_bounds = array<i64: 520, 128>}, {pipeline_mode = #tpu.pipeline_mode<synchronous>, transform_indices = @transform_2, window_bounds = array<i64: 10, 128>}, {transform_indices = @transform_3, window_bounds = array<i64: 32, 8>}]} {
    %c0 = arith.constant 0 : index
    %c0_0 = arith.constant 0 : index
    %0 = vector.load %arg1[%c0, %c0_0] : memref<32x32xbf16, #tpu.memory_space<vmem>>, vector<32x32xbf16>
    %c0_1 = arith.constant 0 : index
    %c0_2 = arith.constant 0 : index
    %1 = vector.load %arg2[%c0_1, %c0_2] : memref<520x128xbf16, #tpu.memory_space<vmem>>, vector<32x128xbf16>
    %c0_3 = arith.constant 0 : index
    %c0_4 = arith.constant 0 : index
    %2 = vector.load %arg3[%c0_3, %c0_4] : memref<10x128xf32, #tpu.memory_space<vmem>>, vector<1x128xf32>
    %cst = arith.constant dense<0.000000e+00> : vector<32x128xf32>
    %3 = tpu.matmul %0, %1, %cst {dimension_numbers = #tpu.dot_dimension_numbers<[1], [0], [0], [1], [0, 0, 1, 1], [], []>} : vector<32x32xbf16>, vector<32x128xbf16>, vector<32x128xf32> -> vector<32x128xf32>
    %4 = arith.truncf %3 : vector<32x128xf32> to vector<32x128xbf16>
    %5 = arith.truncf %2 : vector<1x128xf32> to vector<1x128xbf16>
    %6 = vector.broadcast %5 : vector<1x128xbf16> to vector<32x128xbf16>
    %7 = arith.addf %4, %6 : vector<32x128xbf16>
    %cst_5 = arith.constant 0.000000e+00 : bf16
    %8 = vector.broadcast %cst_5 : bf16 to vector<32x128xbf16>
    %9 = arith.maximumf %7, %8 : vector<32x128xbf16>
    %c32 = arith.constant 32 : index
    %c0_6 = arith.constant 0 : index
    %10 = vector.load %arg2[%c32, %c0_6] : memref<520x128xbf16, #tpu.memory_space<vmem>>, vector<128x128xbf16>
    %c1 = arith.constant 1 : index
    %c0_7 = arith.constant 0 : index
    %11 = vector.load %arg3[%c1, %c0_7] : memref<10x128xf32, #tpu.memory_space<vmem>>, vector<1x128xf32>
    %cst_8 = arith.constant dense<0.000000e+00> : vector<32x128xf32>
    %12 = tpu.matmul %9, %10, %cst_8 {dimension_numbers = #tpu.dot_dimension_numbers<[1], [0], [0], [1], [0, 0, 1, 1], [], []>} : vector<32x128xbf16>, vector<128x128xbf16>, vector<32x128xf32> -> vector<32x128xf32>
    %13 = arith.truncf %12 : vector<32x128xf32> to vector<32x128xbf16>
    %14 = arith.truncf %11 : vector<1x128xf32> to vector<1x128xbf16>
    %15 = vector.broadcast %14 : vector<1x128xbf16> to vector<32x128xbf16>
    %16 = arith.addf %13, %15 : vector<32x128xbf16>
    %cst_9 = arith.constant 0.000000e+00 : bf16
    %17 = vector.broadcast %cst_9 : bf16 to vector<32x128xbf16>
    %18 = arith.maximumf %16, %17 : vector<32x128xbf16>
    %c160 = arith.constant 160 : index
    %c0_10 = arith.constant 0 : index
    %19 = vector.load %arg2[%c160, %c0_10] : memref<520x128xbf16, #tpu.memory_space<vmem>>, vector<128x64xbf16>
    %c2 = arith.constant 2 : index
    %c0_11 = arith.constant 0 : index
    %20 = vector.load %arg3[%c2, %c0_11] : memref<10x128xf32, #tpu.memory_space<vmem>>, vector<1x64xf32>
    %cst_12 = arith.constant dense<0.000000e+00> : vector<32x64xf32>
    %21 = tpu.matmul %18, %19, %cst_12 {dimension_numbers = #tpu.dot_dimension_numbers<[1], [0], [0], [1], [0, 0, 1, 1], [], []>} : vector<32x128xbf16>, vector<128x64xbf16>, vector<32x64xf32> -> vector<32x64xf32>
    %22 = arith.truncf %21 : vector<32x64xf32> to vector<32x64xbf16>
    %23 = arith.truncf %20 : vector<1x64xf32> to vector<1x64xbf16>
    %24 = vector.broadcast %23 : vector<1x64xbf16> to vector<32x64xbf16>
    %25 = arith.addf %22, %24 : vector<32x64xbf16>
    %cst_13 = arith.constant 0.000000e+00 : bf16
    %26 = vector.broadcast %cst_13 : bf16 to vector<32x64xbf16>
    %27 = arith.maximumf %25, %26 : vector<32x64xbf16>
    %c288 = arith.constant 288 : index
    %c0_14 = arith.constant 0 : index
    %28 = vector.load %arg2[%c288, %c0_14] : memref<520x128xbf16, #tpu.memory_space<vmem>>, vector<64x64xbf16>
    %c3 = arith.constant 3 : index
    %c0_15 = arith.constant 0 : index
    %29 = vector.load %arg3[%c3, %c0_15] : memref<10x128xf32, #tpu.memory_space<vmem>>, vector<1x64xf32>
    %cst_16 = arith.constant dense<0.000000e+00> : vector<32x64xf32>
    %30 = tpu.matmul %27, %28, %cst_16 {dimension_numbers = #tpu.dot_dimension_numbers<[1], [0], [0], [1], [0, 0, 1, 1], [], []>} : vector<32x64xbf16>, vector<64x64xbf16>, vector<32x64xf32> -> vector<32x64xf32>
    %31 = arith.truncf %30 : vector<32x64xf32> to vector<32x64xbf16>
    %32 = arith.truncf %29 : vector<1x64xf32> to vector<1x64xbf16>
    %33 = vector.broadcast %32 : vector<1x64xbf16> to vector<32x64xbf16>
    %34 = arith.addf %31, %33 : vector<32x64xbf16>
    %cst_17 = arith.constant 0.000000e+00 : bf16
    %35 = vector.broadcast %cst_17 : bf16 to vector<32x64xbf16>
    %36 = arith.maximumf %34, %35 : vector<32x64xbf16>
    %c352 = arith.constant 352 : index
    %c0_18 = arith.constant 0 : index
    %37 = vector.load %arg2[%c352, %c0_18] : memref<520x128xbf16, #tpu.memory_space<vmem>>, vector<64x32xbf16>
    %c4 = arith.constant 4 : index
    %c0_19 = arith.constant 0 : index
    %38 = vector.load %arg3[%c4, %c0_19] : memref<10x128xf32, #tpu.memory_space<vmem>>, vector<1x32xf32>
    %cst_20 = arith.constant dense<0.000000e+00> : vector<32x32xf32>
    %39 = tpu.matmul %36, %37, %cst_20 {dimension_numbers = #tpu.dot_dimension_numbers<[1], [0], [0], [1], [0, 0, 1, 1], [], []>} : vector<32x64xbf16>, vector<64x32xbf16>, vector<32x32xf32> -> vector<32x32xf32>
    %40 = arith.truncf %39 : vector<32x32xf32> to vector<32x32xbf16>
    %41 = arith.truncf %38 : vector<1x32xf32> to vector<1x32xbf16>
    %42 = vector.broadcast %41 : vector<1x32xbf16> to vector<32x32xbf16>
    %43 = arith.addf %40, %42 : vector<32x32xbf16>
    %cst_21 = arith.constant 0.000000e+00 : bf16
    %44 = vector.broadcast %cst_21 : bf16 to vector<32x32xbf16>
    %45 = arith.maximumf %43, %44 : vector<32x32xbf16>
    %c416 = arith.constant 416 : index
    %c0_22 = arith.constant 0 : index
    %46 = vector.load %arg2[%c416, %c0_22] : memref<520x128xbf16, #tpu.memory_space<vmem>>, vector<32x32xbf16>
    %c5 = arith.constant 5 : index
    %c0_23 = arith.constant 0 : index
    %47 = vector.load %arg3[%c5, %c0_23] : memref<10x128xf32, #tpu.memory_space<vmem>>, vector<1x32xf32>
    %cst_24 = arith.constant dense<0.000000e+00> : vector<32x32xf32>
    %48 = tpu.matmul %45, %46, %cst_24 {dimension_numbers = #tpu.dot_dimension_numbers<[1], [0], [0], [1], [0, 0, 1, 1], [], []>} : vector<32x32xbf16>, vector<32x32xbf16>, vector<32x32xf32> -> vector<32x32xf32>
    %49 = arith.truncf %48 : vector<32x32xf32> to vector<32x32xbf16>
    %50 = arith.truncf %47 : vector<1x32xf32> to vector<1x32xbf16>
    %51 = vector.broadcast %50 : vector<1x32xbf16> to vector<32x32xbf16>
    %52 = arith.addf %49, %51 : vector<32x32xbf16>
    %cst_25 = arith.constant 0.000000e+00 : bf16
    %53 = vector.broadcast %cst_25 : bf16 to vector<32x32xbf16>
    %54 = arith.maximumf %52, %53 : vector<32x32xbf16>
    %c448 = arith.constant 448 : index
    %c0_26 = arith.constant 0 : index
    %55 = vector.load %arg2[%c448, %c0_26] : memref<520x128xbf16, #tpu.memory_space<vmem>>, vector<32x16xbf16>
    %c6 = arith.constant 6 : index
    %c0_27 = arith.constant 0 : index
    %56 = vector.load %arg3[%c6, %c0_27] : memref<10x128xf32, #tpu.memory_space<vmem>>, vector<1x16xf32>
    %cst_28 = arith.constant dense<0.000000e+00> : vector<32x16xf32>
    %57 = tpu.matmul %54, %55, %cst_28 {dimension_numbers = #tpu.dot_dimension_numbers<[1], [0], [0], [1], [0, 0, 1, 1], [], []>} : vector<32x32xbf16>, vector<32x16xbf16>, vector<32x16xf32> -> vector<32x16xf32>
    %58 = arith.truncf %57 : vector<32x16xf32> to vector<32x16xbf16>
    %59 = arith.truncf %56 : vector<1x16xf32> to vector<1x16xbf16>
    %60 = vector.broadcast %59 : vector<1x16xbf16> to vector<32x16xbf16>
    %61 = arith.addf %58, %60 : vector<32x16xbf16>
    %cst_29 = arith.constant 0.000000e+00 : bf16
    %62 = vector.broadcast %cst_29 : bf16 to vector<32x16xbf16>
    %63 = arith.maximumf %61, %62 : vector<32x16xbf16>
    %c480 = arith.constant 480 : index
    %c0_30 = arith.constant 0 : index
    %64 = vector.load %arg2[%c480, %c0_30] : memref<520x128xbf16, #tpu.memory_space<vmem>>, vector<16x16xbf16>
    %c7 = arith.constant 7 : index
    %c0_31 = arith.constant 0 : index
    %65 = vector.load %arg3[%c7, %c0_31] : memref<10x128xf32, #tpu.memory_space<vmem>>, vector<1x16xf32>
    %cst_32 = arith.constant dense<0.000000e+00> : vector<32x16xf32>
    %66 = tpu.matmul %63, %64, %cst_32 {dimension_numbers = #tpu.dot_dimension_numbers<[1], [0], [0], [1], [0, 0, 1, 1], [], []>} : vector<32x16xbf16>, vector<16x16xbf16>, vector<32x16xf32> -> vector<32x16xf32>
    %67 = arith.truncf %66 : vector<32x16xf32> to vector<32x16xbf16>
    %68 = arith.truncf %65 : vector<1x16xf32> to vector<1x16xbf16>
    %69 = vector.broadcast %68 : vector<1x16xbf16> to vector<32x16xbf16>
    %70 = arith.addf %67, %69 : vector<32x16xbf16>
    %cst_33 = arith.constant 0.000000e+00 : bf16
    %71 = vector.broadcast %cst_33 : bf16 to vector<32x16xbf16>
    %72 = arith.maximumf %70, %71 : vector<32x16xbf16>
    %c496 = arith.constant 496 : index
    %c0_34 = arith.constant 0 : index
    %73 = vector.load %arg2[%c496, %c0_34] : memref<520x128xbf16, #tpu.memory_space<vmem>>, vector<16x8xbf16>
    %c8 = arith.constant 8 : index
    %c0_35 = arith.constant 0 : index
    %74 = vector.load %arg3[%c8, %c0_35] : memref<10x128xf32, #tpu.memory_space<vmem>>, vector<1x8xf32>
    %cst_36 = arith.constant dense<0.000000e+00> : vector<32x8xf32>
    %75 = tpu.matmul %72, %73, %cst_36 {dimension_numbers = #tpu.dot_dimension_numbers<[1], [0], [0], [1], [0, 0, 1, 1], [], []>} : vector<32x16xbf16>, vector<16x8xbf16>, vector<32x8xf32> -> vector<32x8xf32>
    %76 = arith.truncf %75 : vector<32x8xf32> to vector<32x8xbf16>
    %77 = arith.truncf %74 : vector<1x8xf32> to vector<1x8xbf16>
    %78 = vector.broadcast %77 : vector<1x8xbf16> to vector<32x8xbf16>
    %79 = arith.addf %76, %78 : vector<32x8xbf16>
    %cst_37 = arith.constant 0.000000e+00 : bf16
    %80 = vector.broadcast %cst_37 : bf16 to vector<32x8xbf16>
    %81 = arith.maximumf %79, %80 : vector<32x8xbf16>
    %c512 = arith.constant 512 : index
    %c0_38 = arith.constant 0 : index
    %82 = vector.load %arg2[%c512, %c0_38] : memref<520x128xbf16, #tpu.memory_space<vmem>>, vector<8x8xbf16>
    %c9 = arith.constant 9 : index
    %c0_39 = arith.constant 0 : index
    %83 = vector.load %arg3[%c9, %c0_39] : memref<10x128xf32, #tpu.memory_space<vmem>>, vector<1x8xf32>
    %cst_40 = arith.constant dense<0.000000e+00> : vector<32x8xf32>
    %84 = tpu.matmul %81, %82, %cst_40 {dimension_numbers = #tpu.dot_dimension_numbers<[1], [0], [0], [1], [0, 0, 1, 1], [], []>} : vector<32x8xbf16>, vector<8x8xbf16>, vector<32x8xf32> -> vector<32x8xf32>
    %85 = vector.broadcast %83 : vector<1x8xf32> to vector<32x8xf32>
    %86 = arith.addf %84, %85 : vector<32x8xf32>
    %cst_41 = arith.constant 0.000000e+00 : f32
    %87 = vector.broadcast %cst_41 : f32 to vector<32x8xf32>
    %88 = arith.maximumf %86, %87 : vector<32x8xf32>
    %cst_42 = arith.constant 0.000000e+00 : f32
    %89 = vector.broadcast %cst_42 : f32 to vector<32x8xf32>
    %90 = arith.subf %89, %88 : vector<32x8xf32>
    %91 = math.exp %90 : vector<32x8xf32>
    %cst_43 = arith.constant 1.000000e+00 : f32
    %92 = vector.broadcast %cst_43 : f32 to vector<32x8xf32>
    %93 = arith.addf %92, %91 : vector<32x8xf32>
    %cst_44 = arith.constant 1.000000e+00 : f32
    %94 = vector.broadcast %cst_44 : f32 to vector<32x8xf32>
    %95 = arith.divf %94, %93 : vector<32x8xf32>
    %c0_45 = arith.constant 0 : index
    %c0_46 = arith.constant 0 : index
    %96 = vector.load %arg4[%c0_45, %c0_46] : memref<32x8xf32, #tpu.memory_space<vmem>>, vector<32x8xf32>
    tpu.vector_store %arg4[%c0_45, %c0_46], %95 {strides = array<i32>} : memref<32x8xf32, #tpu.memory_space<vmem>>, vector<32x8xf32>,
    return
  }
  func.func @transform_0(%arg0: i32) -> (i32, i32) {
    %c0_i32 = arith.constant 0 : i32
    %c0_i32_0 = arith.constant 0 : i32
    return %arg0, %c0_i32 : i32, i32
  }
  func.func @transform_1(%arg0: i32) -> (i32, i32) {
    %c0_i32 = arith.constant 0 : i32
    %c0_i32_0 = arith.constant 0 : i32
    %c0_i32_1 = arith.constant 0 : i32
    return %c0_i32, %c0_i32_0 : i32, i32
  }
  func.func @transform_2(%arg0: i32) -> (i32, i32) {
    %c0_i32 = arith.constant 0 : i32
    %c0_i32_0 = arith.constant 0 : i32
    %c0_i32_1 = arith.constant 0 : i32
    return %c0_i32, %c0_i32_0 : i32, i32
  }
  func.func @transform_3(%arg0: i32) -> (i32, i32) {
    %c0_i32 = arith.constant 0 : i32
    %c0_i32_0 = arith.constant 0 : i32
    return %arg0, %c0_i32 : i32, i32
  }
}

</mosaic_0001>

<bundles_post_ra>
// kernel: net_10relu_forward.1
= control target key start
LH: loop header
LB: loop body
LE: loop exit
PB: predicated region body
PF: predicated region fallthrough
CT: control target
= control target key end

     0   :  { %8 = vsyncpa [#allocation3], 0  ;;  %s1607_s12 = smov 0   ;;  %s1749_s0 = inlined_call_operand.vmem [shape: bf16[64,32], index: 0, kind: input, shape index: {}]   ;;  %s1750_s1 = inlined_call_operand.hbm [shape: bf16[520,128], index: 1, kind: input, shape index: {}]   ;;  %s1751_s2 = inlined_call_operand.vmem [shape: f32[10,128], index: 2, kind: input, shape index: {}]   ;;  %s1752_s3 = inlined_call_operand.vmem [shape: f32[64,8], index: 3, kind: output, shape index: {}]  }
   0x1 LB: > { %s1247_s13 = sadd.s32 4294967295, %s1581_s12   ;;  %p1249_p0 = scmp.ge.s32.totalorder %s1581_s12, 1  ;;  %s1581_s12 = sphi %s1607_s12, %s14_s12  }
   0x2   : > { %p113_p1 = scmp.lt.s32.totalorder %s1581_s12, 3  ;;  %s1583_s14 = smov [#allocation2]  }
   0x3   : > { %s125_s15 = sshll.u32 %s1583_s14, 4  ;;  %p1621_p3 = scmp.eq.s32.totalorder %s1247_s13, 0  ;;  %s126_s15 = int_to_ptr.vmem [resolvable:$true] %s125_s15 }
   0x4   : > { %p1615_p2 = pnand %p1249_p0, %p113_p1  ;;  %s1543_s21 = scalar_lea.hbm %s1750_s1, 4160 }
   0x5   : > { %s1757_s17 = scalar_select %p1621_p3, 1, 0 }
   0x6   : > { %s1756_s16 = scalar_select %p1615_p2, 1, 0 }
   0x7   : > { %p1475_p4 = pneg %p1615_p2  ;;  %p1544_p6 = scmp.ne.s32.totalorder %s1750_s1, %s1543_s21 }
   0x8   : > { %p1550_p10 = scmp.lt.u32.totalorder %s1543_s21, %s1750_s1 }
   0x9   : > { %p1629_p5 = pnand %p1621_p3, %p1475_p4 }
   0xb   : > { %p1545_p7 = pneg %p1629_p5 }
   0xd   : > { %p1546_p8 = pnand %p1545_p7, %p1544_p6 }
   0xf   : > { %p1547_p9 = pneg %p1546_p8 }
  0x11   : > { %p1552_p11 = pnand %p1550_p10, %p1547_p9 }
  0x13   : > { %1555 = shalt.err (!%p1552_p11)
}
  0x14   : > { %s1556_s26 = scalar_lea.vmem %s126_s15, 4160  ;;  %p1564_p1 = scmp.lt.s32.totalorder %s126_s15, %s126_s15 }
  0x15   : > { %p1557_p12 = scmp.ne.s32.totalorder %s126_s15, %s1556_s26  ;;  %p1565_p4 = scmp.lt.s32.totalorder %s1556_s26, %s1556_s26 }
  0x17   : > { %p1559_p13 = pnand %p1557_p12, %p1545_p7  ;;  %p1566_p3 = por %p1565_p4, %p1564_p1 }
  0x19   : > { %p1560_p0 = pneg %p1559_p13 }
  0x1b   : > { %p1567_p2 = pnand %p1566_p3, %p1560_p0 }
  0x1d   : > { %1570 = shalt.err (!%p1567_p2)
}
  0x1e   : > { %s1584_s27 = smov 64   ;;  %s1585_s28 = smov 4  }
  0x1f   : > { %1478 = dma.hbm_to_vmem [thread:$0]  (!%p1629_p5), %s1750_s1, 4160, %s126_s15, [#allocation3], %s1584_s27, %s1584_s27, %s1585_s28  }
  0x20   : > { %p1759_p6 = scmp.ne.s32.totalorder %s1756_s16, 0 }
  0x21   : > { %p1760_p8 = scmp.ne.s32.totalorder (!%p1759_p6), %s1757_s17, 0 }
  0x22   : > { %153 = sbr.rel (%p1759_p6) target bundleno = 2299 (0x8fb), region = 32 }
  0x29   : > { %1576 = dma.done.wait (%p1760_p8), [#allocation3], 4160  }
  0x2a   : > { %1578 = vsyncadd (%p1760_p8), [#allocation3], 4294963136  ;;  %s1254_s4 = sshll.u32 %s1247_s13, 2  ;;  %v1493_v0 = vld [vmem:[#allocation2] sm:$0xff]   ;;  %v1494_v1 = vld [vmem:[#allocation2 + $0x8] sm:$0xff]   ;;  %vm221_vm0 = vcmask 261120   ;;  %v283_v18 = vlaneseq }
  0x2b   : > { %p178_p2 = scmp.lt.s32.totalorder %s1254_s4, 7  ;;  %1364 = vmatprep.subr.bf16.mxu0 %v1493_v0  ;;  %v1497_v3 = vld [vmem:[#allocation2 + $0x10] sm:$0xff]   ;;  %v1498_v4 = vld [vmem:[#allocation2 + $0x18] sm:$0xff]   ;;  %v1499_v6 = vld [vmem:[#allocation2 + $0x20] sm:$0xff]   ;;  %v1586_v33 = vmov 0   ;;  %vm580_vm1 = vcmask 523264  }
  0x2c   : > { %1365 = vmatpush3.bf16.msra.mxu0 %v1493_v0  ;;  %1372 = vmatprep.subr.bf16.mxu1 %v1497_v3  ;;  %v1500_v7 = vld [vmem:[#allocation2 + $0x28] sm:$0xff]   ;;  %v1501_v8 = vld [vmem:[#allocation2 + $0x30] sm:$0xff]   ;;  %v1502_v9 = vld [vmem:[#allocation2 + $0x38] sm:$0xff]   ;;  %v284_v21 = vshrl.u32 %v283_v18, 7  ;;  %vm933_vm2 = vcmask 130048   ;;  %vm1094_vm3 = vcmask 1043456  }
  0x2d   : > { %s1762_s4 = smov (!%p178_p2, %s1254_s4), 7  ;;  %1366 = vmatprep.subr.bf16.mxu0 %v1494_v1  ;;  %1373 = vmatpush3.bf16.msra.mxu1 %v1497_v3  ;;  %v1503_v10 = vld [vmem:[#allocation2 + $0x40] sm:$0xff]   ;;  %v1504_v11 = vld [vmem:[#allocation2 + $0x48] sm:$0xff]   ;;  %v1505_v12 = vld [vmem:[#allocation2 + $0x50] sm:$0xff]   ;;  %vm1087_vm4 = vcmask 64512  }
  0x2e   : > { %s1255_s5 = sshll.u32 %s1762_s4, 2  ;;  %1374 = vmatprep.subr.bf16.mxu1 %v1498_v4  ;;  %v1506_v13 = vld [vmem:[#allocation2 + $0x58] sm:$0xff]   ;;  %v1507_v14 = vld [vmem:[#allocation2 + $0x60] sm:$0xff]   ;;  %v1508_v15 = vld [vmem:[#allocation2 + $0x68] sm:$0xff]   ;;  %v1668_v23 = vsub.s32 0, %v284_v21  ;;  %s1257_s30 = sshll.u32 %s1762_s4, 3 }
  0x2f   : > { %s181_s8 = scalar_lea.vmem %s1749_s0, %s1255_s5  ;;  %v1509_v16 = vld [vmem:[#allocation2 + $0x70] sm:$0xff]   ;;  %v1510_v17 = vld [vmem:[#allocation2 + $0x78] sm:$0xff]   ;;  %v198_v19 = vld [vmem:[%s1751_s2] sm:$0x1]  ;;  %s187_s7 = scalar_lea.vmem %s1752_s3, %s1257_s30 }
  0x30   : > { %v1495_v2 = vld [vmem:[%s181_s8] sm:$0xff]   ;;  %v1496_v5 = vld [vmem:[%s181_s8 + $0x8] sm:$0xff]   ;;  %1367 = vmatpush3.bf16.msra.mxu0 %v1494_v1  ;;  %v279_v20 = vpack.c.bf16 %v198_v19, %v198_v19  ;;  %v1513_v38 = vld [vmem:[#allocation2 + $0x90] sm:$0xff]  }
  0x31   : > { %1368 = vmatprep.mubr.msk.bf16.mxu0 %vm221_vm0, %v1495_v2  ;;  %1375 = vmatpush3.bf16.msra.mxu1 %v1498_v4  ;;  %v1511_v36 = vld [vmem:[#allocation2 + $0x80] sm:$0xff]   ;;  %v1512_v37 = vld [vmem:[#allocation2 + $0x88] sm:$0xff]   ;;  %v1514_v39 = vld [vmem:[#allocation2 + $0x98] sm:$0xff]  }
  0x32   : > { %1376 = vmatprep.subr.bf16.mxu1 %v1499_v6  ;;  %1392 = vmatprep.subr.bf16.mxu0 %v1505_v12  ;;  %v281_v22 = vpack.i.b16 %v279_v20, %v279_v20  ;;  %v307_v40 = vld [vmem:[%s1751_s2 + $0x1] sm:$0x1]  ;;  %v1516_v55 = vld [vmem:[#allocation2 + $0xa8] sm:$0xff]   ;;  %v1517_v56 = vld [vmem:[#allocation2 + $0xb0] sm:$0xff]  }
  0x33   : > { %1369 = vmatmul.mubr.msk.bf16.vlgmr.msra.gmra.mrb[0].mxu0 %vm221_vm0, %v1496_v5  ;;  %v407_v41 = vpack.c.bf16 %v307_v40, %v307_v40  ;;  %v1515_v54 = vld [vmem:[#allocation2 + $0xa0] sm:$0xff]   ;;  %v1518_v57 = vld [vmem:[#allocation2 + $0xb8] sm:$0xff]  }
  0x34   : > { %1393 = vmatpush3.bf16.msra.mxu0 %v1505_v12  ;;  %v286_v26 = vrot.slane %v281_v22, %v1668_v23  ;;  %v435_v58 = vld [vmem:[%s1751_s2 + $0x2] sm:$0x1] }
  0x35   : > { %1377 = vmatpush3.bf16.msra.mxu1 %v1499_v6  ;;  %1394 = vmatprep.subr.bf16.mxu0 %v1506_v13  ;;  %v409_v42 = vpack.i.b16 %v407_v41, %v407_v41  ;;  %v535_v59 = vpack.c.bf16 %v435_v58, %v435_v58  ;;  %v1525_v58 = vld [vmem:[#allocation2 + $0xf0] sm:$0xff]  }
  0x36   : > { %1378 = vmatprep.subr.bf16.mxu1 %v1500_v7 }
  0x37   : > { %v414_v45 = vrot.slane %v409_v42, %v1668_v23  ;;  %v537_v60 = vpack.i.b16 %v535_v59, %v535_v59  ;;  %v1523_v42 = vld [vmem:[#allocation2 + $0xe0] sm:$0xff]  }
  0x38   : > { %1395 = vmatpush3.bf16.msra.mxu0 %v1506_v13  ;;  %v842_v59 = vld [vmem:[%s1751_s2 + $0x6] sm:$0x1] }
  0x39   : > { %1379 = vmatpush3.bf16.msra.mxu1 %v1500_v7  ;;  %1396 = vmatprep.subr.bf16.mxu0 %v1507_v14  ;;  %v542_v63 = vrot.slane %v537_v60, %v1668_v23  ;;  %v912_v60 = vpack.c.bf16 %v842_v59, %v842_v59 }
  0x3a   : > { %1380 = vmatprep.subr.bf16.mxu1 %v1501_v8 }
  0x3c   : > { %1397 = vmatpush3.bf16.msra.mxu0 %v1507_v14 }
  0x3d   : > { %1381 = vmatpush3.bf16.msra.mxu1 %v1501_v8  ;;  %1398 = vmatprep.subr.bf16.mxu0 %v1508_v15  ;;  %v1519_v8 = vld [vmem:[#allocation2 + $0xc0] sm:$0xff]  }
  0x3e   : > { %1382 = vmatprep.subr.bf16.mxu1 %v1502_v9 }
  0x40   : > { %1399 = vmatpush3.bf16.msra.mxu0 %v1508_v15 }
  0x41   : > { %1383 = vmatpush3.bf16.msra.mxu1 %v1502_v9  ;;  %1400 = vmatprep.subr.bf16.mxu0 %v1509_v16  ;;  %v1520_v9 = vld [vmem:[#allocation2 + $0xc8] sm:$0xff]  }
  0x42   : > { %1384 = vmatprep.subr.bf16.mxu1 %v1503_v10 }
  0x44   : > { %1401 = vmatpush3.bf16.msra.mxu0 %v1509_v16 }
  0x45   : > { %1385 = vmatpush3.bf16.msra.mxu1 %v1503_v10  ;;  %1402 = vmatprep.subr.bf16.mxu0 %v1510_v17  ;;  %v555_v10 = vld [vmem:[%s1751_s2 + $0x3] sm:$0x1] }
  0x46   : > { %1386 = vmatprep.subr.bf16.mxu1 %v1504_v11 }
  0x48   : > { %1403 = vmatpush3.bf16.msra.mxu0 %v1510_v17 }
  0x49   : > { %1387 = vmatpush3.bf16.msra.mxu1 %v1504_v11  ;;  %1404 = vmatprep.subr.bf16.mxu0 %v1511_v36  ;;  %v638_v11 = vpack.c.bf16 %v555_v10, %v555_v10  ;;  %v926_v10 = vld [vmem:[%s1751_s2 + $0x7] sm:$0x1] }
  0x4a   : > { %1412 = vmatprep.subr.bf16.mxu1 %v1513_v38 }
  0x4b   : > { %v640_v12 = vpack.i.b16 %v638_v11, %v638_v11  ;;  %v991_v11 = vpack.c.bf16 %v926_v10, %v926_v10 }
  0x4c   : > { %1405 = vmatpush3.bf16.msra.mxu0 %v1511_v36 }
  0x4d   : > { %1406 = vmatprep.subr.bf16.mxu0 %v1512_v37  ;;  %v645_v15 = vrot.slane %v640_v12, %v1668_v23  ;;  %v993_v12 = vpack.i.b16 %v991_v11, %v991_v11 }
  0x50   : > { %1407 = vmatpush3.bf16.msra.mxu0 %v1512_v37 }
  0x51   : > { %1424 = vmatprep.subr.bf16.mxu0 %v1517_v56 }
 0x106   : > { %v1370_v24 = vpop.f32.mrb[0].mxu0 }
 0x107   : > { %v262_v25 = vpop.f32.mrb[1].mxu0 }
 0x108   : > { %v1371_v27 = vpop.f32.mrb[2].mxu0 }
 0x109   : > { %v278_v28 = vpack.c.bf16 %v1371_v27, %v1370_v24  ;;  %v265_v29 = vpop.f32.mrb[3].mxu0  ;;  %v658_v27 = vld [vmem:[%s1751_s2 + $0x4] sm:$0x1] }
 0x10a   : > { %v277_v30 = vpack.c.bf16 %v265_v29, %v262_v25  ;;  %v1521_v25 = vld [vmem:[#allocation2 + $0xd0] sm:$0xff]  }
 0x10b   : > { %v288_v31 = vadd.bf16 %v286_v26, %v278_v28  ;;  %v740_v28 = vpack.c.bf16 %v658_v27, %v658_v27  ;;  %v1005_v27 = vld [vmem:[%s1751_s2 + $0x8] sm:$0x1] }
 0x10c   : > { %v287_v32 = vadd.bf16 %v286_v26, %v277_v30  ;;  %v1522_v26 = vld [vmem:[#allocation2 + $0xd8] sm:$0xff]  }
 0x10d   : > { %v290_v35 = vmax.bf16 %v1586_v33, %v288_v31  ;;  %v742_v29 = vpack.i.b16 %v740_v28, %v740_v28  ;;  %v1069_v28 = vpack.c.bf16 %v1005_v27, %v1005_v27 }
 0x10e   : > { %v289_v34 = vmax.bf16 %v1586_v33, %v287_v32 }
 0x10f   : > { %v747_v32 = vrot.slane %v742_v29, %v1668_v23  ;;  %v1071_v29 = vpack.i.b16 %v1069_v28, %v1069_v28 }
 0x110   : > { %1388 = vmatprep.mubr.bf16.mxu1 %v289_v34 }
 0x111   : > { %1389 = vmatmul.mubr.bf16.vlgmr.msra.gmra.mrb[0].mxu1 %v290_v35 }
 0x112   : > { %1413 = vmatpush3.bf16.msra.mxu1 %v1513_v38 }
 0x113   : > { %1414 = vmatprep.subr.bf16.mxu1 %v1514_v39 }
 0x116   : > { %1415 = vmatpush3.bf16.msra.mxu1 %v1514_v39 }
 0x117   : > { %1416 = vmatprep.subr.bf16.mxu1 %v1515_v54 }
 0x11a   : > { %1417 = vmatpush3.bf16.msra.mxu1 %v1515_v54 }
 0x11b   : > { %1418 = vmatprep.subr.bf16.mxu1 %v1516_v55 }
 0x11e   : > { %1419 = vmatpush3.bf16.msra.mxu1 %v1516_v55 }
 0x11f   : > { %1436 = vmatprep.subr.bf16.mxu1 %v1521_v25 }
 0x1e4   : > { %v1390_v43 = vpop.f32.mrb[0].mxu1 }
 0x1e5   : > { %v390_v44 = vpop.f32.mrb[1].mxu1 }
 0x1e6   : > { %v1391_v46 = vpop.f32.mrb[2].mxu1 }
 0x1e7   : > { %v406_v47 = vpack.c.bf16 %v1391_v46, %v1390_v43  ;;  %v393_v48 = vpop.f32.mrb[3].mxu1  ;;  %v1524_v43 = vld [vmem:[#allocation2 + $0xe8] sm:$0xff]  }
 0x1e8   : > { %v405_v49 = vpack.c.bf16 %v393_v48, %v390_v44  ;;  %v756_v44 = vld [vmem:[%s1751_s2 + $0x5] sm:$0x1] }
 0x1e9   : > { %v416_v50 = vadd.bf16 %v414_v45, %v406_v47 }
 0x1ea   : > { %v415_v51 = vadd.bf16 %v414_v45, %v405_v49  ;;  %v826_v45 = vpack.c.bf16 %v756_v44, %v756_v44 }
 0x1eb   : > { %v418_v53 = vmax.bf16 %v1586_v33, %v416_v50 }
 0x1ec   : > { %v417_v52 = vmax.bf16 %v1586_v33, %v415_v51  ;;  %v828_v46 = vpack.i.b16 %v826_v45, %v826_v45 }
 0x1ee   : > { %1408 = vmatprep.mubr.bf16.mxu0 %v417_v52  ;;  %v833_v49 = vrot.slane %v828_v46, %v1668_v23 }
 0x1ef   : > { %1409 = vmatmul.mubr.bf16.vlgmr.msra.gmra.mrb[4].mxu0 %v418_v53 }
 0x1f0   : > { %1425 = vmatpush3.bf16.msra.mxu0 %v1517_v56 }
 0x1f1   : > { %1426 = vmatprep.subr.bf16.mxu0 %v1518_v57 }
 0x1f4   : > { %1427 = vmatpush3.bf16.msra.mxu0 %v1518_v57 }
 0x1f5   : > { %1428 = vmatprep.subr.bf16.mxu0 %v1519_v8 }
 0x1f8   : > { %1429 = vmatpush3.bf16.msra.mxu0 %v1519_v8 }
 0x1f9   : > { %1430 = vmatprep.subr.bf16.mxu0 %v1520_v9 }
 0x1fc   : > { %1431 = vmatpush3.bf16.msra.mxu0 %v1520_v9  ;;  %v1526_v9 = vld [vmem:[#allocation2 + $0xf8] sm:$0xff]  }
 0x1fd   : > { %1444 = vmatprep.subr.bf16.mxu0 %v1523_v42 }
 0x2c2   : > { %v1410_v61 = vpop.f32.mrb[4].mxu0 }
 0x2c3   : > { %v518_v62 = vpop.f32.mrb[5].mxu0 }
 0x2c4   : > { %v1411_v0 = vpop.f32.mrb[6].mxu0 }
 0x2c5   : > { %v534_v1 = vpack.c.bf16 %v1411_v0, %v1410_v61  ;;  %v521_v2 = vpop.f32.mrb[7].mxu0  ;;  %v914_v61 = vpack.i.b16 %v912_v60, %v912_v60 }
 0x2c6   : > { %v533_v3 = vpack.c.bf16 %v521_v2, %v518_v62 }
 0x2c7   : > { %v544_v4 = vadd.bf16 %v542_v63, %v534_v1  ;;  %v919_v0 = vrot.slane %v914_v61, %v1668_v23 }
 0x2c8   : > { %v543_v5 = vadd.bf16 %v542_v63, %v533_v3 }
 0x2c9   : > { %v546_v7 = vmax.bf16 %v1586_v33, %v544_v4 }
 0x2ca   : > { %v545_v6 = vmax.bf16 %v1586_v33, %v543_v5 }
 0x2cc   : > { %1420 = vmatprep.mubr.msk.bf16.mxu1 %vm580_vm1, %v545_v6 }
 0x2cd   : > { %1421 = vmatmul.mubr.msk.bf16.vlgmr.msra.gmra.mrb[4].mxu1 %vm580_vm1, %v546_v7 }
 0x2ce   : > { %1437 = vmatpush3.bf16.msra.mxu1 %v1521_v25  ;;  %v1081_v25 = vld [vmem:[#allocation2 + $0x100] sm:$0xf] }
 0x2cf   : > { %1438 = vmatprep.subr.bf16.mxu1 %v1522_v26 }
 0x2d2   : > { %1439 = vmatpush3.bf16.msra.mxu1 %v1522_v26  ;;  %v1096_v26 = vsel %vm1094_vm3, %v1081_v25, 0 }
 0x2d3   : > { %1452 = vmatprep.subr.bf16.mxu1 %v1525_v58 }
 0x3a0   : > { %v1422_v13 = vpop.f32.mrb[4].mxu1 }
 0x3a1   : > { %v621_v14 = vpop.f32.mrb[5].mxu1 }
 0x3a2   : > { %v1423_v16 = vpop.f32.mrb[6].mxu1 }
 0x3a3   : > { %v637_v17 = vpack.c.bf16 %v1423_v16, %v1422_v13  ;;  %v624_v18 = vpop.f32.mrb[7].mxu1 }
 0x3a4   : > { %v636_v19 = vpack.c.bf16 %v624_v18, %v621_v14 }
 0x3a5   : > { %v647_v20 = vadd.bf16 %v645_v15, %v637_v17 }
 0x3a6   : > { %v646_v21 = vadd.bf16 %v645_v15, %v636_v19  ;;  %v998_v15 = vrot.slane %v993_v12, %v1668_v23 }
 0x3a7   : > { %v649_v24 = vmax.bf16 %v1586_v33, %v647_v20 }
 0x3a8   : > { %v648_v22 = vmax.bf16 %v1586_v33, %v646_v21 }
 0x3aa   : > { %1432 = vmatprep.mubr.msk.bf16.mxu0 %vm580_vm1, %v648_v22 }
 0x3ab   : > { %1433 = vmatmul.mubr.msk.bf16.vlgmr.msra.gmra.mrb[8].mxu0 %vm580_vm1, %v649_v24 }
 0x3ac   : > { %1445 = vmatpush3.bf16.msra.mxu0 %v1523_v42  ;;  %v1306_v42 = vld [vmem:[%s1751_s2 + $0x9] ss:$0 sm:$0xff] }
 0x3ad   : > { %1446 = vmatprep.subr.bf16.mxu0 %v1524_v43 }
 0x3b0   : > { %1447 = vmatpush3.bf16.msra.mxu0 %v1524_v43 }
 0x3b1   : > { %1458 = vmatprep.subr.bf16.mxu0 %v1526_v9 }
 0x47e   : > { %v1434_v30 = vpop.f32.mrb[8].mxu0 }
 0x47f   : > { %v723_v31 = vpop.f32.mrb[9].mxu0 }
 0x480   : > { %v1435_v34 = vpop.f32.mrb[10].mxu0 }
 0x481   : > { %v739_v35 = vpack.c.bf16 %v1435_v34, %v1434_v30  ;;  %v726_v36 = vpop.f32.mrb[11].mxu0 }
 0x482   : > { %v738_v37 = vpack.c.bf16 %v726_v36, %v723_v31 }
 0x483   : > { %v749_v38 = vadd.bf16 %v747_v32, %v739_v35 }
 0x484   : > { %v748_v39 = vadd.bf16 %v747_v32, %v738_v37  ;;  %v1076_v32 = vrot.slane %v1071_v29, %v1668_v23 }
 0x485   : > { %v751_v41 = vmax.bf16 %v1586_v33, %v749_v38 }
 0x486   : > { %v750_v40 = vmax.bf16 %v1586_v33, %v748_v39 }
 0x488   : > { %1440 = vmatprep.mubr.msk.bf16.mxu1 %vm221_vm0, %v750_v40 }
 0x489   : > { %1441 = vmatmul.mubr.msk.bf16.vlgmr.msra.gmra.mrb[8].mxu1 %vm221_vm0, %v751_v41 }
 0x48a   : > { %1453 = vmatpush3.bf16.msra.mxu1 %v1525_v58 }
 0x48b   : > { %1470 = vmatprep.subr.msk.bf16.mxu1 %vm1094_vm3, %v1081_v25 }
 0x55c   : > { %v1442_v47 = vpop.f32.mrb[8].mxu1 }
 0x55d   : > { %v809_v48 = vpop.f32.mrb[9].mxu1 }
 0x55e   : > { %v1443_v50 = vpop.f32.mrb[10].mxu1 }
 0x55f   : > { %v825_v51 = vpack.c.bf16 %v1443_v50, %v1442_v47  ;;  %v812_v52 = vpop.f32.mrb[11].mxu1 }
 0x560   : > { %v824_v53 = vpack.c.bf16 %v812_v52, %v809_v48 }
 0x561   : > { %v835_v54 = vadd.bf16 %v833_v49, %v825_v51 }
 0x562   : > { %v834_v55 = vadd.bf16 %v833_v49, %v824_v53 }
 0x563   : > { %v837_v57 = vmax.bf16 %v1586_v33, %v835_v54 }
 0x564   : > { %v836_v56 = vmax.bf16 %v1586_v33, %v834_v55 }
 0x566   : > { %1448 = vmatprep.mubr.msk.bf16.mxu0 %vm221_vm0, %v836_v56 }
 0x567   : > { %1449 = vmatmul.mubr.msk.bf16.vlgmr.msra.gmra.mrb[12].mxu0 %vm221_vm0, %v837_v57 }
 0x568   : > { %1459 = vmatpush3.bf16.msra.mxu0 %v1526_v9 }
 0x63a   : > { %v1450_v62 = vpop.f32.mrb[12].mxu0 }
 0x63b   : > { %v895_v63 = vpop.f32.mrb[13].mxu0 }
 0x63c   : > { %v1451_v1 = vpop.f32.mrb[14].mxu0 }
 0x63d   : > { %v911_v2 = vpack.c.bf16 %v1451_v1, %v1450_v62  ;;  %v898_v3 = vpop.f32.mrb[15].mxu0 }
 0x63e   : > { %v910_v4 = vpack.c.bf16 %v898_v3, %v895_v63 }
 0x63f   : > { %v921_v5 = vadd.bf16 %v919_v0, %v911_v2 }
 0x640   : > { %v920_v6 = vadd.bf16 %v919_v0, %v910_v4 }
 0x641   : > { %v923_v8 = vmax.bf16 %v1586_v33, %v921_v5 }
 0x642   : > { %v922_v7 = vmax.bf16 %v1586_v33, %v920_v6 }
 0x644   : > { %1454 = vmatprep.mubr.msk.bf16.mxu1 %vm933_vm2, %v922_v7 }
 0x645   : > { %1455 = vmatmul.mubr.msk.bf16.vlgmr.msra.gmra.mrb[12].mxu1 %vm933_vm2, %v923_v8 }
 0x646   : > { %1465 = vmatpush3.bf16.msra.mxu1 %v1096_v26 }
 0x718   : > { %v1456_v13 = vpop.f32.mrb[12].mxu1 }
 0x719   : > { %v974_v14 = vpop.f32.mrb[13].mxu1 }
 0x71a   : > { %v1457_v16 = vpop.f32.mrb[14].mxu1 }
 0x71b   : > { %v990_v17 = vpack.c.bf16 %v1457_v16, %v1456_v13  ;;  %v977_v18 = vpop.f32.mrb[15].mxu1 }
 0x71c   : > { %v989_v19 = vpack.c.bf16 %v977_v18, %v974_v14 }
 0x71d   : > { %v1000_v20 = vadd.bf16 %v998_v15, %v990_v17 }
 0x71e   : > { %v999_v21 = vadd.bf16 %v998_v15, %v989_v19 }
 0x71f   : > { %v1002_v24 = vmax.bf16 %v1586_v33, %v1000_v20 }
 0x720   : > { %v1001_v22 = vmax.bf16 %v1586_v33, %v999_v21 }
 0x722   : > { %1460 = vmatprep.mubr.msk.bf16.mxu0 %vm933_vm2, %v1001_v22 }
 0x723   : > { %1461 = vmatmul.mubr.msk.bf16.vlgmr.msra.gmra.mrb[16].mxu0 %vm933_vm2, %v1002_v24 }
 0x7f6   : > { %v1462_v30 = vpop.f32.mrb[16].mxu0 }
 0x7f7   : > { %v1052_v31 = vpop.f32.mrb[17].mxu0 }
 0x7f8   : > { %v1463_v34 = vpop.f32.mrb[18].mxu0 }
 0x7f9   : > { %v1068_v35 = vpack.c.bf16 %v1463_v34, %v1462_v30  ;;  %v1055_v36 = vpop.f32.mrb[19].mxu0 }
 0x7fa   : > { %v1067_v37 = vpack.c.bf16 %v1055_v36, %v1052_v31 }
 0x7fb   : > { %v1078_v38 = vadd.bf16 %v1076_v32, %v1068_v35 }
 0x7fc   : > { %v1077_v39 = vadd.bf16 %v1076_v32, %v1067_v37 }
 0x7fd   : > { %v1080_v41 = vmax.bf16 %v1586_v33, %v1078_v38 }
 0x7fe   : > { %v1079_v40 = vmax.bf16 %v1586_v33, %v1077_v39 }
 0x800   : > { %1466 = vmatprep.mubr.msk.bf16.mxu1 %vm1087_vm4, %v1079_v40 }
 0x801   : > { %1467 = vmatmul.mubr.msk.bf16.vlgmr.msra.gmra.mrb[16].mxu1 %vm1087_vm4, %v1080_v41 }
 0x8d4   : > { %v1468_v23 = vpop.f32.mrb[16].mxu1 }
 0x8d5   : > { %v1141_v43 = vadd.f32 %v1468_v23, %v1306_v42  ;;  %v1132_v44 = vpop.f32.mrb[17].mxu1 }
 0x8d6   : > { %v1133_v45 = vadd.f32 %v1306_v42, %v1132_v44  ;;  %v1469_v46 = vpop.f32.mrb[18].mxu1 }
 0x8d7   : > { %v1149_v47 = vmax.f32 %v1141_v43, 0.0  ;;  %v1144_v48 = vadd.f32 %v1469_v46, %v1306_v42  ;;  %v1135_v49 = vpop.f32.mrb[19].mxu1 }
 0x8d8   : > { %v1147_v50 = vmax.f32 %v1133_v45, 0.0  ;;  %v1136_v51 = vadd.f32 %v1306_v42, %v1135_v49 }
 0x8d9   : > { %v1153_v52 = vsub.f32 0.0, %v1149_v47  ;;  %v1150_v33 = vmax.f32 %v1144_v48, 0.0 }
 0x8da   : > { %v1151_v53 = vsub.f32 0.0, %v1147_v50  ;;  %v1148_v54 = vmax.f32 %v1136_v51, 0.0 }
 0x8db   : > { %v1159_v55 = vmul.f32 1.442695, %v1153_v52  ;;  %v1154_v56 = vsub.f32 0.0, %v1150_v33 }
 0x8dc   : > { %v1155_v57 = vmul.f32 1.442695, %v1151_v53  ;;  %v1152_v58 = vsub.f32 0.0, %v1148_v54 }
 0x8dd   : > { %1527 = vpow2.f32 %v1159_v55  ;;  %v1161_v59 = vmul.f32 1.442695, %v1154_v56 }
 0x8de   : > { %1529 = vpow2.f32 %v1155_v57  ;;  %v1157_v60 = vmul.f32 1.442695, %v1152_v58 }
 0x8df   : > { %1531 = vpow2.f32 %v1161_v59 }
 0x8e0   : > { %1533 = vpow2.f32 %v1157_v60 }
 0x8e7   : > { %v1528_v61 = vpop.eup %1527 }
 0x8e8   : > { %v1530_v62 = vpop.eup %1529  ;;  %v1165_v2 = vadd.f32 1.0, %v1528_v61 }
 0x8e9   : > { %v1532_v63 = vpop.eup %1531  ;;  %v1163_v0 = vadd.f32 1.0, %v1530_v62 }
 0x8ea   : > { %v1534_v1 = vpop.eup %1533  ;;  %v1166_v3 = vadd.f32 1.0, %v1532_v63 }
 0x8eb   : > { %1535 = vrcp.f32 %v1163_v0  ;;  %v1164_v4 = vadd.f32 1.0, %v1534_v1 }
 0x8ed   : > { %1537 = vrcp.f32 %v1164_v4 }
 0x8ee   : > { %1539 = vrcp.f32 %v1165_v2 }
 0x8ef   : > { %1541 = vrcp.f32 %v1166_v3 }
 0x8f5   : > { %v1536_v5 = vpop.eup %1535 }
 0x8f6   : > { %1175 = vst.msk [vmem:[%s187_s7] sm:$0xff] %vm1087_vm4, %v1536_v5 }
 0x8f7   : > { %v1538_v6 = vpop.eup %1537 }
 0x8f8   : > { %v1540_v7 = vpop.eup %1539  ;;  %1176 = vst.msk [vmem:[%s187_s7 + $0x8] sm:$0xff] %vm1087_vm4, %v1538_v6 }
 0x8f9   : > { %v1542_v8 = vpop.eup %1541  ;;  %1177 = vst.msk [vmem:[%s187_s7 + $0x10] sm:$0xff] %vm1087_vm4, %v1540_v7 }
 0x8fa   : > { %1178 = vst.msk [vmem:[%s187_s7 + $0x18] sm:$0xff] %vm1087_vm4, %v1542_v8 }
 0x8fb PF: > { %s14_s12 = sadd.s32 1, %s1581_s12  }
 0x8fc   : > { %p11_p3 = scmp.ge.s32.totalorder %s14_s12, 4  }
 0x8fe   :  { %13 = sbr.rel (!%p11_p3) target bundleno = 1 (0x1), region = 67 }
 0x905   :  { %1201 = vsyncpa [#allocation3], 1 }
 0x906   :  { %1203 = vsyncpa [#allocation3 + $0x1], 1 }

</bundles_post_ra>
